<compile_context>
chip_gen: v7x
topology: tpu7x:2x2x1
jax: 0.10.0
libtpu: 0.0.40
codegen_flags: <defaults>
</compile_context>

<pallas_src>
import functools

import jax
import jax.numpy as jnp
from jax.experimental import pallas as pl
from jax.experimental.pallas import tpu as pltpu


# ----------------------------- tiling helpers ------------------------------ #

def _divisors(n):
    return [i for i in range(1, n + 1) if n % i == 0]


def _pick_tile(dim, target, align):
    """Largest divisor of `dim` that is <= target and a multiple of `align`.

    Falls back to the full dim (always a legal BlockSpec block size).
    TODO(synk): pad awkward (prime-ish) dims instead of a full-dim fallback;
    ViTDet dims (multiples of 64/128) never trigger it.
    """
    if dim <= target:
        return dim
    for t in range(min(target, dim), align - 1, -1):
        if dim % t == 0 and t % align == 0:
            return t
    return dim


# ------------------------------ Linear kernel ------------------------------ #

def _linear_kernel(x_ref, w_ref, b_ref, o_ref, acc_ref):
    # x: (tm, tk), w: (tk, tn), b: (1, tn) -> o: (tm, tn); k-axis is reduced.
    @pl.when(pl.program_id(2) == 0)
    def _():
        acc_ref[...] = jnp.zeros_like(acc_ref)

    acc_ref[...] += jnp.dot(x_ref[...], w_ref[...],
                            preferred_element_type=jnp.float32)

    @pl.when(pl.program_id(2) == pl.num_programs(2) - 1)
    def _():
        o_ref[...] = (acc_ref[...] + b_ref[...]).astype(o_ref.dtype)


def linear(x2d, w, b, compute_dtype=jnp.bfloat16, out_dtype=None):
    """y = x2d @ w.T + b  (nn.Linear semantics), MXU-tiled, f32 accumulation."""
    M, Din = x2d.shape
    Dout = w.shape[0]
    cd = jnp.dtype(compute_dtype)
    od = cd if out_dtype is None else jnp.dtype(out_dtype)

    wt = jnp.transpose(w).astype(cd)            # (Din, Dout)
    xc = x2d.astype(cd)
    b2 = b.reshape(1, Dout).astype(jnp.float32)

    m_align = 16 if cd == jnp.dtype(jnp.bfloat16) else 8
    tm = _pick_tile(M, 512, m_align)
    tn = _pick_tile(Dout, 512, 128)
    tk = _pick_tile(Din, 768, 128)

    est = (2 * (tm * tk + tk * tn) * cd.itemsize      # x, w (double-buffered)
           + 2 * tn * 4                               # bias
           + 2 * tm * tn * od.itemsize                # out (double-buffered)
           + tm * tn * 4)                             # f32 accumulator
    vmem_limit = int(min(max(2 * est, 32 << 20), 56 << 20))

    return pl.pallas_call(
        _linear_kernel,
        out_shape=jax.ShapeDtypeStruct((M, Dout), od),
        grid_spec=pltpu.PrefetchScalarGridSpec(
            num_scalar_prefetch=0,
            grid=(M // tm, Dout // tn, Din // tk),
            in_specs=[
                pl.BlockSpec((tm, tk), lambda i, j, k: (i, k)),
                pl.BlockSpec((tk, tn), lambda i, j, k: (k, j)),
                pl.BlockSpec((1, tn), lambda i, j, k: (0, j)),
            ],
            out_specs=pl.BlockSpec((tm, tn), lambda i, j, k: (i, j)),
            scratch_shapes=[pltpu.VMEM((tm, tn), jnp.float32)],
        ),
        compiler_params=pltpu.CompilerParams(
            dimension_semantics=("parallel", "parallel", "arbitrary"),
            vmem_limit_bytes=vmem_limit),
    )(xc, wt, b2)


# ----------------------------- Attention kernel ----------------------------- #

def _softmax_pv_pack_store(s, v_ref, o_ref, g_img, nh_blk, approx_recip):
    """Row softmax (f32), PV matmul (f32 acc), lane-dense head packing."""
    G, N, _ = s.shape
    d = v_ref.shape[-1]
    m = jnp.max(s, axis=-1, keepdims=True)
    s = jnp.exp(s - m)                         # exp overwrites the score temp
    l = jnp.sum(s, axis=-1, keepdims=True)
    o = jnp.einsum('gqk,gkd->gqd', s.astype(v_ref.dtype), v_ref[...],
                   preferred_element_type=jnp.float32)       # (G, N, d)
    o = o * pl.reciprocal(l, approx=approx_recip)
    # Lane-dense packing: (G, N, d) -> (g_img, N, nh_blk*d), heads on lanes.
    o = o.reshape(g_img, nh_blk, N, d)
    parts = [o[:, h] for h in range(nh_blk)]
    packed = parts[0] if nh_blk == 1 else jnp.concatenate(parts, axis=-1)
    o_ref[...] = packed.astype(o_ref.dtype)


def _attn_kernel_rel(q_ref, k_ref, rel_ref, oh_ref, v_ref, o_ref, *,
                     scale, g_img, nh_blk, approx_recip):
    q = q_ref[...] * scale                                   # (G, N, d)
    s = jnp.einsum('gqd,gkd->gqk', q, k_ref[...],
                   preferred_element_type=jnp.float32)       # (G, N, N)
    rel = rel_ref[...]                                       # (G, N, H+W)
    G, N, hw = rel.shape
    # Decomposed rel-pos bias via a second MXU contraction against the shared
    # (N, H+W) key-position one-hot (exactly rel_h[row(k)] + rel_w[col(k)]).
    bias = jax.lax.dot_general(
        rel.reshape(G * N, hw), oh_ref[...],
        (((1,), (1,)), ((), ())),
        preferred_element_type=jnp.float32).reshape(G, N, N)
    _softmax_pv_pack_store(s + bias, v_ref, o_ref, g_img, nh_blk, approx_recip)


def _attn_kernel_norel(q_ref, k_ref, v_ref, o_ref, *,
                       scale, g_img, nh_blk, approx_recip):
    q = q_ref[...] * scale
    s = jnp.einsum('gqd,gkd->gqk', q, k_ref[...],
                   preferred_element_type=jnp.float32)
    _softmax_pv_pack_store(s, v_ref, o_ref, g_img, nh_blk, approx_recip)


_ATTN_BLOCK_BUDGET = 20 * 1024 * 1024      # per-step VMEM budget (all gens)


def _attn_vmem_bytes(G, N, d, hw, esize, use_rel):
    blocks = 4 * G * N * d                                   # q, k, v, out
    if use_rel:
        blocks += G * N * hw + N * hw                        # rel_hw + one-hot
    # 2x double-buffering on blocks + 1.5x the f32 score tile (exp in place).
    return 2 * blocks * esize + int(1.5 * G * N * N * 4)


def _select_group(B, num_heads, N, d, hw, esize, use_rel):
    """Pick (g_img, nh_blk): G = g_img*nh_blk consecutive (image, head) rows
    processed per grid step, under the VMEM budget."""
    def fits(G):
        return _attn_vmem_bytes(G, N, d, hw, esize, use_rel) <= _ATTN_BLOCK_BUDGET

    # Preferred: whole images per step (heads lane-packed to the full `dim`,
    # which deletes the downstream output transpose).
    img_cands = [g for g in _divisors(B) if fits(g * num_heads)]
    if img_cands:
        even = [g for g in img_cands if (B // g) % 2 == 0]   # v7x: 2 TensorCores
        g_img = max(even) if even else max(img_cands)
        return g_img, num_heads
    # Fallback: a divisor-of-num_heads group of heads per step.
    head_cands = [g for g in _divisors(num_heads) if fits(g)]
    # TODO(synk): if even G=1 does not fit (global attention, N ~ 4096 on
    #   v7x's 64 MiB VMEM), a flash-style q/kv split with online softmax is
    #   required; not needed at windowed-ViTDet shapes.
    return 1, (max(head_cands) if head_cands else 1)


def attention_core(q, k, v, rel_hw, onehot, *, scale, B, num_heads,
                   compute_dtype=jnp.bfloat16):
    """q, k, v: (BH, N, d); rel_hw: (BH, N, H+W) or None; onehot: (N, H+W).

    Returns (out, g_img, nh_blk) where out is (steps*g_img, N, nh_blk*d) with
    heads concatenated lane-dense (nh_blk == num_heads => out is (B, N, dim))."""
    BH, N, d = q.shape
    use_rel = rel_hw is not None
    hw = rel_hw.shape[-1] if use_rel else 0
    cd = jnp.dtype(compute_dtype)
    approx = (cd == jnp.dtype(jnp.bfloat16))   # exact reciprocal in f32 mode

    g_img, nh_blk = _select_group(B, num_heads, N, d, hw, cd.itemsize, use_rel)
    G = g_img * nh_blk
    steps = BH // G

    in_specs = [pl.BlockSpec((G, N, d), lambda b: (b, 0, 0)),
                pl.BlockSpec((G, N, d), lambda b: (b, 0, 0))]
    args = [q.astype(cd), k.astype(cd)]
    if use_rel:
        in_specs += [pl.BlockSpec((G, N, hw), lambda b: (b, 0, 0)),
                     # shared one-hot: same block every step -> stays resident
                     pl.BlockSpec((N, hw), lambda b: (0, 0))]
        args += [rel_hw.astype(cd), onehot.astype(cd)]
        kern = functools.partial(_attn_kernel_rel, scale=scale, g_img=g_img,
                                 nh_blk=nh_blk, approx_recip=approx)
    else:
        kern = functools.partial(_attn_kernel_norel, scale=scale, g_img=g_img,
                                 nh_blk=nh_blk, approx_recip=approx)
    in_specs += [pl.BlockSpec((G, N, d), lambda b: (b, 0, 0))]
    args += [v.astype(cd)]

    vmem_limit = int(min(max(
        2 * _attn_vmem_bytes(G, N, d, hw, cd.itemsize, use_rel), 32 << 20),
        56 << 20))

    out = pl.pallas_call(
        kern,
        out_shape=jax.ShapeDtypeStruct((steps * g_img, N, nh_blk * d), cd),
        grid_spec=pltpu.PrefetchScalarGridSpec(
            num_scalar_prefetch=0,
            grid=(steps,),
            in_specs=in_specs,
            out_specs=pl.BlockSpec((g_img, N, nh_blk * d), lambda b: (b, 0, 0)),
        ),
        compiler_params=pltpu.CompilerParams(
            dimension_semantics=("parallel",),
            vmem_limit_bytes=vmem_limit),
    )(*args)
    return out, g_img, nh_blk


# ----------------------- relative-position glue (JAX) ----------------------- #

def get_rel_pos(q_size, k_size, rel_pos):
    max_rel_dist = int(2 * max(q_size, k_size) - 1)
    if rel_pos.shape[0] != max_rel_dist:
        # Mirrors F.interpolate(mode='linear') resize.
        rel_pos = jax.image.resize(
            rel_pos, (max_rel_dist, rel_pos.shape[1]), method="linear")
    q_coords = jnp.arange(q_size)[:, None] * max(k_size / q_size, 1.0)
    k_coords = jnp.arange(k_size)[None, :] * max(q_size / k_size, 1.0)
    relative_coords = (q_coords - k_coords) + (k_size - 1) * max(q_size / k_size, 1.0)
    return rel_pos[relative_coords.astype(jnp.int32)]


def _decomposed_rel_pos(q, rel_pos_h, rel_pos_w, q_size, k_size):
    """rel_h: (BH, N, k_h), rel_w: (BH, N, k_w) — decomposed bias terms."""
    q_h, q_w = q_size
    k_h, k_w = k_size
    Rh = get_rel_pos(q_h, k_h, rel_pos_h)      # (q_h, k_h, c)
    Rw = get_rel_pos(q_w, k_w, rel_pos_w)      # (q_w, k_w, c)
    B, _, dim = q.shape
    r_q = q.reshape(B, q_h, q_w, dim)
    rel_h = jnp.einsum('bhwc,hkc->bhwk', r_q, Rh).reshape(B, q_h * q_w, k_h)
    rel_w = jnp.einsum('bhwc,wkc->bhwk', r_q, Rw).reshape(B, q_h * q_w, k_w)
    return rel_h, rel_w


# -------------------------------- full forward ------------------------------ #

def attention_forward(x, params, num_heads, use_rel_pos,
                      compute_dtype=jnp.bfloat16):
    B, H, W, dim = x.shape
    assert dim % num_heads == 0
    head_dim = dim // num_heads
    scale = head_dim ** (-0.5)
    N = H * W
    BH = B * num_heads
    cd = jnp.dtype(compute_dtype)

    x2d = x.reshape(B * N, dim)
    qkv = linear(x2d, params["qkv_w"], params["qkv_b"], compute_dtype=cd)
    # (B*N, 3*dim) in compute dtype -> (3, BH, N, head_dim)
    qkv = (qkv.reshape(B, N, 3, num_heads, head_dim)
              .transpose(2, 0, 3, 1, 4)
              .reshape(3, BH, N, head_dim))
    q, k, v = qkv[0], qkv[1], qkv[2]

    if use_rel_pos:
        # Per-head decomposed bias terms + ONE shared key-position one-hot
        # matrix (no replicated one-hot columns per head through HBM).
        rel_h, rel_w = _decomposed_rel_pos(
            q, params["rel_pos_h"], params["rel_pos_w"], (H, W), (H, W))
        rel_hw = jnp.concatenate([rel_h, rel_w], axis=-1)      # (BH, N, H+W)
        eh = jnp.repeat(jnp.eye(H, dtype=cd), W, axis=0)       # (N, H) row one-hot
        ew = jnp.tile(jnp.eye(W, dtype=cd), (H, 1))            # (N, W) col one-hot
        onehot = jnp.concatenate([eh, ew], axis=-1)            # (N, H+W)
    else:
        rel_hw, onehot = None, None

    out, _, nh_blk = attention_core(
        q, k, v, rel_hw, onehot, scale=scale, B=B, num_heads=num_heads,
        compute_dtype=cd)

    if nh_blk == num_heads:
        # Lane-dense image-packed output (B, N, dim): head transpose was done
        # in-kernel, so this is a pure reshape into the proj GEMM.
        out2d = out.reshape(B * N, dim)
    else:
        out2d = (out.reshape(B, num_heads // nh_blk, N, nh_blk * head_dim)
                    .transpose(0, 2, 1, 3)
                    .reshape(B * N, dim))

    out2d = linear(out2d, params["proj_w"], params["proj_b"],
                   compute_dtype=cd, out_dtype=x.dtype)
    return out2d.reshape(B, H, W, dim)


# ----------------------------- pure-JAX reference --------------------------- #

def _full_rel_pos_bias(q, rel_pos_h, rel_pos_w, q_size, k_size):
    q_h, q_w = q_size
    k_h, k_w = k_size
    Rh = get_rel_pos(q_h, k_h, rel_pos_h)
    Rw = get_rel_pos(q_w, k_w, rel_pos_w)
    B, _, dim = q.shape
    r_q = q.reshape(B, q_h, q_w, dim)
    rel_h = jnp.einsum('bhwc,hkc->bhwk', r_q, Rh)
    rel_w = jnp.einsum('bhwc,wkc->bhwk', r_q, Rw)
    bias = rel_h[:, :, :, :, None] + rel_w[:, :, :, None, :]
    return bias.reshape(B, q_h * q_w, k_h * k_w)


def attention_reference(x, params, num_heads, use_rel_pos):
    B, H, W, dim = x.shape
    head_dim = dim // num_heads
    scale = head_dim ** (-0.5)
    N = H * W
    x2d = x.reshape(B * N, dim)
    qkv = x2d @ params["qkv_w"].T + params["qkv_b"]
    qkv = (
        qkv.reshape(B, N, 3, num_heads, head_dim)
        .transpose(2, 0, 3, 1, 4)
        .reshape(3, B * num_heads, N, head_dim)
    )
    q, k, v = qkv[0], qkv[1], qkv[2]
    attn = (q * scale) @ jnp.swapaxes(k, -2, -1)
    if use_rel_pos:
        attn = attn + _full_rel_pos_bias(
            q, params["rel_pos_h"], params["rel_pos_w"], (H, W), (H, W))
    attn = jax.nn.softmax(attn, axis=-1)
    out = attn @ v
    out = (
        out.reshape(B, num_heads, H, W, head_dim)
        .transpose(0, 2, 3, 1, 4)
        .reshape(B * N, dim)
    )
    out = out @ params["proj_w"].T + params["proj_b"]
    return out.reshape(B, H, W, dim)


# ------------------------------------ main ---------------------------------- #

if __name__ == "__main__":
    B, H, W = 2, 8, 8
    dim, num_heads = 64, 2
    head_dim = dim // num_heads

    key = jax.random.PRNGKey(0)
    kx, k1, k2, k3, k4, k5, k6 = jax.random.split(key, 7)

    x = jax.random.normal(kx, (B, H, W, dim), dtype=jnp.float32)
    params = {
        "qkv_w": jax.random.normal(k1, (3 * dim, dim), jnp.float32) * 0.02,
        "qkv_b": jax.random.normal(k2, (3 * dim,), jnp.float32) * 0.02,
        "proj_w": jax.random.normal(k3, (dim, dim), jnp.float32) * 0.02,
        "proj_b": jax.random.normal(k4, (dim,), jnp.float32) * 0.02,
        # rel_pos_zero_init=False style deterministic init (std=0.02)
        "rel_pos_h": jax.random.normal(k5, (2 * H - 1, head_dim), jnp.float32) * 0.02,
        "rel_pos_w": jax.random.normal(k6, (2 * W - 1, head_dim), jnp.float32) * 0.02,
    }

    ref = attention_reference(x, params, num_heads, use_rel_pos=True)
    ref_nrp = attention_reference(x, params, num_heads, use_rel_pos=False)

    # f32 path (strict tolerance).
    out = attention_forward(x, params, num_heads, use_rel_pos=True,
                            compute_dtype=jnp.float32)
    out = jax.block_until_ready(out)
    assert out.shape == (B, H, W, dim)
    assert jnp.allclose(out, ref, atol=1e-4, rtol=1e-4), "f32 rel-pos mismatch"

    # Specialized no-rel-pos path (no bias inputs at all).
    out_nrp = attention_forward(x, params, num_heads, use_rel_pos=False,
                                compute_dtype=jnp.float32)
    out_nrp = jax.block_until_ready(out_nrp)
    assert jnp.allclose(out_nrp, ref_nrp, atol=1e-4, rtol=1e-4), "no-rel-pos mismatch"

    # Default bf16-operand path (full-rate MXU, bf16 inter-kernel tensors,
    # f32 accumulation + f32 softmax math) — looser tolerance.
    out_bf16 = attention_forward(x, params, num_heads, use_rel_pos=True)
    out_bf16 = jax.block_until_ready(out_bf16)
    assert out_bf16.dtype == x.dtype
    assert jnp.allclose(out_bf16, ref, atol=2e-2, rtol=2e-2), "bf16 path mismatch"

    print("KERNEL_OK")
</pallas_src>

<mosaic_0001>
module attributes {stable_mosaic.version = 11 : i64} {
  func.func @_linear_kernel(%arg0: i32, %arg1: i32, %arg2: i32, %arg3: memref<128x64xf32, #tpu.memory_space<vmem>>, %arg4: memref<64x192xf32, #tpu.memory_space<vmem>>, %arg5: memref<1x192xf32, #tpu.memory_space<vmem>>, %arg6: memref<128x192xf32, #tpu.memory_space<vmem>>, %arg7: memref<128x192xf32, #tpu.memory_space<vmem>>) attributes {dimension_semantics = [#tpu.dimension_semantics<parallel>, #tpu.dimension_semantics<parallel>, #tpu.dimension_semantics<arbitrary>], iteration_bounds = array<i64: 1, 1, 1>, scalar_prefetch = 0 : i64, scratch_operands = 1 : i64, tpu.core_type = #tpu.core_type<tc>, window_params = [{transform_indices = @transform_0, window_bounds = array<i64: 128, 64>}, {transform_indices = @transform_1, window_bounds = array<i64: 64, 192>}, {transform_indices = @transform_2, window_bounds = array<i64: 1, 192>}, {transform_indices = @transform_3, window_bounds = array<i64: 128, 192>}]} {
    %c0_i32 = arith.constant 0 : i32
    %0 = arith.cmpi eq, %arg2, %c0_i32 : i32
    %1 = arith.extui %0 : i1 to i32
    %c0_i32_0 = arith.constant 0 : i32
    %2 = arith.cmpi ne, %1, %c0_i32_0 : i32
    scf.if %2 {
      %cst_10 = arith.constant 0.000000e+00 : f32
      %12 = vector.broadcast %cst_10 : f32 to vector<128x192xf32>
      %c0_11 = arith.constant 0 : index
      %c0_12 = arith.constant 0 : index
      %13 = vector.load %arg7[%c0_11, %c0_12] : memref<128x192xf32, #tpu.memory_space<vmem>>, vector<128x192xf32>
      tpu.vector_store %arg7[%c0_11, %c0_12], %12 {strides = array<i32>} : memref<128x192xf32, #tpu.memory_space<vmem>>, vector<128x192xf32>,
    } else {
    }
    %c0 = arith.constant 0 : index
    %c0_1 = arith.constant 0 : index
    %3 = vector.load %arg7[%c0, %c0_1] : memref<128x192xf32, #tpu.memory_space<vmem>>, vector<128x192xf32>
    %c0_2 = arith.constant 0 : index
    %c0_3 = arith.constant 0 : index
    %4 = vector.load %arg3[%c0_2, %c0_3] : memref<128x64xf32, #tpu.memory_space<vmem>>, vector<128x64xf32>
    %c0_4 = arith.constant 0 : index
    %c0_5 = arith.constant 0 : index
    %5 = vector.load %arg4[%c0_4, %c0_5] : memref<64x192xf32, #tpu.memory_space<vmem>>, vector<64x192xf32>
    %cst = arith.constant dense<0.000000e+00> : vector<128x192xf32>
    %6 = tpu.matmul %4, %5, %cst {dimension_numbers = #tpu.dot_dimension_numbers<[1], [0], [0], [1], [0, 0, 1, 1], [], []>} : vector<128x64xf32>, vector<64x192xf32>, vector<128x192xf32> -> vector<128x192xf32>
    %7 = arith.addf %3, %6 : vector<128x192xf32>
    %c0_6 = arith.constant 0 : index
    %c0_7 = arith.constant 0 : index
    %8 = vector.load %arg7[%c0_6, %c0_7] : memref<128x192xf32, #tpu.memory_space<vmem>>, vector<128x192xf32>
    tpu.vector_store %arg7[%c0_6, %c0_7], %7 {strides = array<i32>} : memref<128x192xf32, #tpu.memory_space<vmem>>, vector<128x192xf32>,
    %c0_i32_8 = arith.constant 0 : i32
    %9 = arith.cmpi eq, %arg2, %c0_i32_8 : i32
    %10 = arith.extui %9 : i1 to i32
    %c0_i32_9 = arith.constant 0 : i32
    %11 = arith.cmpi ne, %10, %c0_i32_9 : i32
    scf.if %11 {
      %c0_10 = arith.constant 0 : index
      %c0_11 = arith.constant 0 : index
      %12 = vector.load %arg7[%c0_10, %c0_11] : memref<128x192xf32, #tpu.memory_space<vmem>>, vector<128x192xf32>
      %c0_12 = arith.constant 0 : index
      %c0_13 = arith.constant 0 : index
      %13 = vector.load %arg5[%c0_12, %c0_13] : memref<1x192xf32, #tpu.memory_space<vmem>>, vector<1x192xf32>
      %14 = vector.broadcast %13 : vector<1x192xf32> to vector<128x192xf32>
      %15 = arith.addf %12, %14 : vector<128x192xf32>
      %c0_14 = arith.constant 0 : index
      %c0_15 = arith.constant 0 : index
      %16 = vector.load %arg6[%c0_14, %c0_15] : memref<128x192xf32, #tpu.memory_space<vmem>>, vector<128x192xf32>
      tpu.vector_store %arg6[%c0_14, %c0_15], %15 {strides = array<i32>} : memref<128x192xf32, #tpu.memory_space<vmem>>, vector<128x192xf32>,
    } else {
    }
    return
  }
  func.func @transform_0(%arg0: i32, %arg1: i32, %arg2: i32) -> (i32, i32) {
    %c0_i32 = arith.constant 0 : i32
    return %arg0, %arg2 : i32, i32
  }
  func.func @transform_1(%arg0: i32, %arg1: i32, %arg2: i32) -> (i32, i32) {
    %c0_i32 = arith.constant 0 : i32
    return %arg2, %arg1 : i32, i32
  }
  func.func @transform_2(%arg0: i32, %arg1: i32, %arg2: i32) -> (i32, i32) {
    %c0_i32 = arith.constant 0 : i32
    %c0_i32_0 = arith.constant 0 : i32
    return %c0_i32, %arg1 : i32, i32
  }
  func.func @transform_3(%arg0: i32, %arg1: i32, %arg2: i32) -> (i32, i32) {
    %c0_i32 = arith.constant 0 : i32
    return %arg0, %arg1 : i32, i32
  }
}

</mosaic_0001>

<bundles_post_ra>
// kernel: tpu_custom_call.1
= control target key start
LH: loop header
LB: loop body
LE: loop exit
PB: predicated region body
PF: predicated region fallthrough
CT: control target
= control target key end

     0   :  { %vm19_vm0 = vcmask 523264   ;;  %v545_v3 = vmov 0.0   ;;  %v426_v41 = vlaneseq  ;;  %s893_s1 = inlined_call_operand.vmem [shape: f32[64,192], index: 1, kind: input, shape index: {}]   ;;  %s894_s0 = inlined_call_operand.vmem [shape: f32[128,64], index: 0, kind: input, shape index: {}]   ;;  %s895_s2 = inlined_call_operand.vmem [shape: f32[1,192], index: 2, kind: input, shape index: {}]   ;;  %s896_s3 = inlined_call_operand.vmem [shape: f32[128,192], index: 3, kind: output, shape index: {}]  }
   0x1   :  { %v100_v0 = vld [vmem:[%s893_s1 + $0x8] sm:$0xff]  ;;  %v102_v1 = vld [vmem:[%s893_s1 + $0x18] sm:$0xff]  ;;  %v99_v2 = vld [vmem:[%s893_s1] sm:$0xff]  ;;  %228 = vmatprep.mubr.f32.mxu0 %v545_v3  ;;  %276 = vmatprep.mubr.f32.mxu1 %v545_v3  ;;  %20 = vst.msk [vmem:[#allocation2 + $0x8] sm:$0xff] %vm19_vm0, %v545_v3 }
   0x2   :  { %22 = vst.msk [vmem:[#allocation2 + $0x18] sm:$0xff] %vm19_vm0, %v545_v3  ;;  %24 = vst.msk [vmem:[#allocation2 + $0x28] sm:$0xff] %vm19_vm0, %v545_v3  ;;  %v520_v4 = vpack.c.bf16 %v102_v1, %v100_v0  ;;  %v101_v5 = vld [vmem:[%s893_s1 + $0x10] sm:$0xff]  ;;  %v104_v6 = vld [vmem:[%s893_s1 + $0x28] sm:$0xff]  ;;  %v427_v42 = vshrl.u32 %v426_v41, 7 }
   0x3   :  { %26 = vst.msk [vmem:[#allocation2 + $0x38] sm:$0xff] %vm19_vm0, %v545_v3  ;;  %28 = vst.msk [vmem:[#allocation2 + $0x48] sm:$0xff] %vm19_vm0, %v545_v3  ;;  %v106_v7 = vld [vmem:[%s893_s1 + $0x38] sm:$0xff]  ;;  %v522_v8 = vpack.c.bf16 %v101_v5, %v99_v2  ;;  %v103_v10 = vld [vmem:[%s893_s1 + $0x20] sm:$0xff] }
   0x4   :  { %30 = vst.msk [vmem:[#allocation2 + $0x58] sm:$0xff] %vm19_vm0, %v545_v3  ;;  %32 = vst.msk [vmem:[#allocation2 + $0x68] sm:$0xff] %vm19_vm0, %v545_v3  ;;  %v524_v9 = vpack.c.bf16 %v106_v7, %v104_v6  ;;  %v105_v11 = vld [vmem:[%s893_s1 + $0x30] sm:$0xff]  ;;  %v108_v12 = vld [vmem:[%s893_s1 + $0x48] sm:$0xff]  ;;  %521 = vmatprep.subr.bf16.mxu0 %v520_v4  ;;  %536 = vmatprep.subr.bf16.mxu1 %v520_v4  ;;  %v428_v43 = vsub.s32 0, %v427_v42  ;;  %v432_v58 = vsub.s32 1, %v427_v42 }
   0x5   :  { %34 = vst.msk [vmem:[#allocation2 + $0x78] sm:$0xff] %vm19_vm0, %v545_v3  ;;  %36 = vst.msk [vmem:[#allocation2 + $0x88] sm:$0xff] %vm19_vm0, %v545_v3  ;;  %v110_v13 = vld [vmem:[%s893_s1 + $0x58] sm:$0xff]  ;;  %523 = vmatpush1.bf16.msra.mxu0 %v522_v8  ;;  %540 = vmatpush1.bf16.msra.mxu1 %v522_v8  ;;  %v526_v14 = vpack.c.bf16 %v105_v11, %v103_v10  ;;  %v107_v16 = vld [vmem:[%s893_s1 + $0x40] sm:$0xff] }
   0x6   :  { %38 = vst.msk [vmem:[#allocation2 + $0x98] sm:$0xff] %vm19_vm0, %v545_v3  ;;  %40 = vst.msk [vmem:[#allocation2 + $0xa8] sm:$0xff] %vm19_vm0, %v545_v3  ;;  %525 = vmatprep.subr.bf16.mxu0 %v524_v9  ;;  %537 = vmatprep.subr.bf16.mxu1 %v524_v9  ;;  %v528_v15 = vpack.c.bf16 %v110_v13, %v108_v12  ;;  %v109_v17 = vld [vmem:[%s893_s1 + $0x50] sm:$0xff]  ;;  %v112_v18 = vld [vmem:[%s893_s1 + $0x68] sm:$0xff] }
   0x7   :  { %42 = vst.msk [vmem:[#allocation2 + $0xb8] sm:$0xff] %vm19_vm0, %v545_v3  ;;  %44 = vst.msk [vmem:[#allocation2 + $0xc8] sm:$0xff] %vm19_vm0, %v545_v3  ;;  %v114_v19 = vld [vmem:[%s893_s1 + $0x78] sm:$0xff]  ;;  %v530_v20 = vpack.c.bf16 %v109_v17, %v107_v16  ;;  %v111_v22 = vld [vmem:[%s893_s1 + $0x60] sm:$0xff] }
   0x8   :  { %46 = vst.msk [vmem:[#allocation2 + $0xd8] sm:$0xff] %vm19_vm0, %v545_v3  ;;  %48 = vst.msk [vmem:[#allocation2 + $0xe8] sm:$0xff] %vm19_vm0, %v545_v3  ;;  %v532_v21 = vpack.c.bf16 %v114_v19, %v112_v18  ;;  %v113_v23 = vld [vmem:[%s893_s1 + $0x70] sm:$0xff]  ;;  %v83_v25 = vld [vmem:[%s894_s0] sm:$0xff] }
   0x9   :  { %50 = vst.msk [vmem:[#allocation2 + $0xf8] sm:$0xff] %vm19_vm0, %v545_v3  ;;  %527 = vmatpush1.bf16.msra.mxu0 %v526_v14  ;;  %541 = vmatpush1.bf16.msra.mxu1 %v526_v14  ;;  %v534_v24 = vpack.c.bf16 %v113_v23, %v111_v22  ;;  %v91_v26 = vld [vmem:[%s894_s0 + $0x40] sm:$0xff]  ;;  %v84_v27 = vld [vmem:[%s894_s0 + $0x8] sm:$0xff]  ;;  %v85_v29 = vld [vmem:[%s894_s0 + $0x10] sm:$0xff] }
   0xa   :  { %529 = vmatprep.subr.bf16.mxu0 %v528_v15  ;;  %538 = vmatprep.subr.bf16.mxu1 %v528_v15  ;;  %v92_v28 = vld [vmem:[%s894_s0 + $0x48] sm:$0xff]  ;;  %v93_v30 = vld [vmem:[%s894_s0 + $0x50] sm:$0xff]  ;;  %v86_v31 = vld [vmem:[%s894_s0 + $0x18] sm:$0xff] }
   0xb   :  { %v94_v32 = vld [vmem:[%s894_s0 + $0x58] sm:$0xff]  ;;  %v87_v33 = vld [vmem:[%s894_s0 + $0x20] sm:$0xff]  ;;  %v88_v35 = vld [vmem:[%s894_s0 + $0x28] sm:$0xff] }
   0xc   :  { %v95_v34 = vld [vmem:[%s894_s0 + $0x60] sm:$0xff]  ;;  %v96_v36 = vld [vmem:[%s894_s0 + $0x68] sm:$0xff]  ;;  %v89_v37 = vld [vmem:[%s894_s0 + $0x30] sm:$0xff] }
   0xd   :  { %531 = vmatpush1.bf16.msra.mxu0 %v530_v20  ;;  %542 = vmatpush1.bf16.msra.mxu1 %v530_v20  ;;  %v97_v38 = vld [vmem:[%s894_s0 + $0x70] sm:$0xff]  ;;  %v90_v39 = vld [vmem:[%s894_s0 + $0x38] sm:$0xff]  ;;  %v424_v44 = vld [vmem:[%s895_s2] sm:$0x3] }
   0xe   :  { %533 = vmatprep.subr.bf16.mxu0 %v532_v21  ;;  %539 = vmatprep.subr.bf16.mxu1 %v532_v21  ;;  %v98_v40 = vld [vmem:[%s894_s0 + $0x78] sm:$0xff]  ;;  %v729_v45 = vrot.slane %v424_v44, %v428_v43  ;;  %v52_v46 = vld [vmem:[#allocation2 + $0x8] sm:$0xff]  ;;  %v743_v5 = vrot.slane %v424_v44, %v432_v58 }
   0xf   :  { %v68_v47 = vld [vmem:[#allocation2 + $0x88] sm:$0xff]  ;;  %v54_v56 = vld [vmem:[#allocation2 + $0x18] sm:$0xff] }
  0x10   :  { %v70_v57 = vld [vmem:[#allocation2 + $0x98] sm:$0xff]  ;;  %v72_v4 = vld [vmem:[#allocation2 + $0xa8] sm:$0xff] }
  0x11   :  { %535 = vmatpush1.bf16.msra.mxu0 %v534_v24  ;;  %543 = vmatpush1.bf16.msra.mxu1 %v534_v24  ;;  %v58_v12 = vld [vmem:[#allocation2 + $0x38] sm:$0xff] }
  0x12   :  { %v74_v17 = vld [vmem:[#allocation2 + $0xb8] sm:$0xff] }
  0x14   :  { %504 = vmatmul.mubr.msk.f32.vlgmr.msra.gmra.mrb[0].mxu0 %vm19_vm0, %v83_v25  ;;  %512 = vmatmul.mubr.msk.f32.vlgmr.msra.gmra.mrb[0].mxu1 %vm19_vm0, %v91_v26  ;;  %v60_v26 = vld [vmem:[#allocation2 + $0x48] sm:$0xff] }
  0x15   :  { %234 = vmatprep.mubr.f32.mxu0 %v545_v3  ;;  %282 = vmatprep.mubr.f32.mxu1 %v545_v3 }
  0x18   :  { %505 = vmatmul.mubr.msk.f32.gmra.mrb[2].mxu0 %vm19_vm0, %v84_v27  ;;  %513 = vmatmul.mubr.msk.f32.gmra.mrb[2].mxu1 %vm19_vm0, %v92_v28 }
  0x19   :  { %240 = vmatprep.mubr.f32.mxu0 %v545_v3  ;;  %288 = vmatprep.mubr.f32.mxu1 %v545_v3 }
  0x1c   :  { %506 = vmatmul.mubr.msk.f32.gmra.mrb[4].mxu0 %vm19_vm0, %v85_v29  ;;  %514 = vmatmul.mubr.msk.f32.gmra.mrb[4].mxu1 %vm19_vm0, %v93_v30 }
  0x1d   :  { %246 = vmatprep.mubr.f32.mxu0 %v545_v3  ;;  %294 = vmatprep.mubr.f32.mxu1 %v545_v3 }
  0x20   :  { %507 = vmatmul.mubr.msk.f32.gmra.mrb[6].mxu0 %vm19_vm0, %v86_v31  ;;  %515 = vmatmul.mubr.msk.f32.gmra.mrb[6].mxu1 %vm19_vm0, %v94_v32  ;;  %v76_v31 = vld [vmem:[#allocation2 + $0xc8] sm:$0xff] }
  0x21   :  { %252 = vmatprep.mubr.f32.mxu0 %v545_v3  ;;  %300 = vmatprep.mubr.f32.mxu1 %v545_v3 }
  0x24   :  { %508 = vmatmul.mubr.msk.f32.gmra.mrb[8].mxu0 %vm19_vm0, %v87_v33  ;;  %516 = vmatmul.mubr.msk.f32.gmra.mrb[8].mxu1 %vm19_vm0, %v95_v34 }
  0x25   :  { %258 = vmatprep.mubr.f32.mxu0 %v545_v3  ;;  %306 = vmatprep.mubr.f32.mxu1 %v545_v3 }
  0x28   :  { %509 = vmatmul.mubr.msk.f32.gmra.mrb[10].mxu0 %vm19_vm0, %v88_v35  ;;  %517 = vmatmul.mubr.msk.f32.gmra.mrb[10].mxu1 %vm19_vm0, %v96_v36 }
  0x29   :  { %264 = vmatprep.mubr.f32.mxu0 %v545_v3  ;;  %312 = vmatprep.mubr.f32.mxu1 %v545_v3 }
  0x2c   :  { %510 = vmatmul.mubr.msk.f32.gmra.mrb[12].mxu0 %vm19_vm0, %v89_v37  ;;  %518 = vmatmul.mubr.msk.f32.gmra.mrb[12].mxu1 %vm19_vm0, %v97_v38 }
  0x2d   :  { %270 = vmatprep.mubr.f32.mxu0 %v545_v3  ;;  %318 = vmatprep.mubr.f32.mxu1 %v545_v3  ;;  %v56_v3 = vld [vmem:[#allocation2 + $0x28] sm:$0xff] }
  0x30   :  { %511 = vmatmul.mubr.msk.f32.gmra.mrb[14].mxu0 %vm19_vm0, %v90_v39  ;;  %519 = vmatmul.mubr.msk.f32.gmra.mrb[14].mxu1 %vm19_vm0, %v98_v40  ;;  %v62_v40 = vld [vmem:[#allocation2 + $0x58] sm:$0xff] }
  0xe7   :  { %v230_v48 = vpop.f32.mrb[0].mxu0  ;;  %v278_v49 = vpop.f32.mrb[0].mxu1 }
  0xe8   :  { %v232_v50 = vpop.f32.mrb[1].mxu0  ;;  %v280_v51 = vpop.f32.mrb[1].mxu1  ;;  %v436_v54 = vadd.f32 %v729_v45, %v230_v48  ;;  %v452_v55 = vadd.f32 %v729_v45, %v278_v49 }
  0xe9   :  { %v326_v52 = vadd.f32 %v232_v50, %v52_v46  ;;  %v342_v53 = vadd.f32 %v280_v51, %v68_v47  ;;  %v78_v46 = vld [vmem:[#allocation2 + $0xd8] sm:$0xff] }
  0xea   :  { %468 = vst [vmem:[%s896_s3] sm:$0xff] %v436_v54  ;;  %484 = vst [vmem:[%s896_s3 + $0x80] sm:$0xff] %v452_v55  ;;  %v64_v55 = vld [vmem:[#allocation2 + $0x68] sm:$0xff] }
  0xeb   :  { %358 = vst.msk [vmem:[#allocation2 + $0x8] sm:$0xff] %vm19_vm0, %v326_v52  ;;  %374 = vst.msk [vmem:[#allocation2 + $0x88] sm:$0xff] %vm19_vm0, %v342_v53  ;;  %v236_v59 = vpop.f32.mrb[2].mxu0  ;;  %v284_v60 = vpop.f32.mrb[2].mxu1 }
  0xec   :  { %v238_v61 = vpop.f32.mrb[3].mxu0  ;;  %v286_v62 = vpop.f32.mrb[3].mxu1  ;;  %v438_v1 = vadd.f32 %v729_v45, %v236_v59  ;;  %v454_v2 = vadd.f32 %v729_v45, %v284_v60  ;;  %v80_v60 = vld [vmem:[#allocation2 + $0xe8] sm:$0xff] }
  0xed   :  { %v328_v63 = vadd.f32 %v238_v61, %v54_v56  ;;  %v344_v0 = vadd.f32 %v286_v62, %v70_v57 }
  0xee   :  { %470 = vst [vmem:[%s896_s3 + $0x10] sm:$0xff] %v438_v1  ;;  %486 = vst [vmem:[%s896_s3 + $0x90] sm:$0xff] %v454_v2 }
  0xef   :  { %360 = vst.msk [vmem:[#allocation2 + $0x18] sm:$0xff] %vm19_vm0, %v328_v63  ;;  %376 = vst.msk [vmem:[#allocation2 + $0x98] sm:$0xff] %vm19_vm0, %v344_v0  ;;  %v242_v6 = vpop.f32.mrb[4].mxu0  ;;  %v290_v7 = vpop.f32.mrb[4].mxu1 }
  0xf0   :  { %v244_v8 = vpop.f32.mrb[5].mxu0  ;;  %v292_v9 = vpop.f32.mrb[5].mxu1  ;;  %v440_v15 = vadd.f32 %v729_v45, %v242_v6  ;;  %v456_v16 = vadd.f32 %v729_v45, %v290_v7  ;;  %v66_v6 = vld [vmem:[#allocation2 + $0x78] sm:$0xff] }
  0xf1   :  { %v330_v10 = vadd.f32 %v244_v8, %v56_v3  ;;  %v346_v11 = vadd.f32 %v292_v9, %v72_v4 }
  0xf2   :  { %v393_v13 = vld [vmem:[#allocation2 + $0x8] sm:$0xff]  ;;  %472 = vst [vmem:[%s896_s3 + $0x20] sm:$0xff] %v440_v15  ;;  %488 = vst [vmem:[%s896_s3 + $0xa0] sm:$0xff] %v456_v16 }
  0xf3   :  { %v409_v14 = vld [vmem:[#allocation2 + $0x88] sm:$0xff]  ;;  %v437_v18 = vadd.f32 %v743_v5, %v393_v13  ;;  %362 = vst.msk [vmem:[#allocation2 + $0x28] sm:$0xff] %vm19_vm0, %v330_v10  ;;  %378 = vst.msk [vmem:[#allocation2 + $0xa8] sm:$0xff] %vm19_vm0, %v346_v11  ;;  %v248_v20 = vpop.f32.mrb[6].mxu0  ;;  %v296_v21 = vpop.f32.mrb[6].mxu1  ;;  %v82_v11 = vld [vmem:[#allocation2 + $0xf8] sm:$0xff] }
  0xf4   :  { %v453_v19 = vadd.f32 %v743_v5, %v409_v14  ;;  %v250_v22 = vpop.f32.mrb[7].mxu0  ;;  %v298_v23 = vpop.f32.mrb[7].mxu1  ;;  %v442_v29 = vadd.f32 %v729_v45, %v248_v20  ;;  %v458_v30 = vadd.f32 %v729_v45, %v296_v21 }
  0xf5   :  { %469 = vst.msk [vmem:[%s896_s3 + $0x8] sm:$0xff] %vm19_vm0, %v437_v18  ;;  %v332_v24 = vadd.f32 %v250_v22, %v58_v12  ;;  %v348_v25 = vadd.f32 %v298_v23, %v74_v17 }
  0xf6   :  { %485 = vst.msk [vmem:[%s896_s3 + $0x88] sm:$0xff] %vm19_vm0, %v453_v19  ;;  %v395_v27 = vld [vmem:[#allocation2 + $0x18] sm:$0xff]  ;;  %474 = vst [vmem:[%s896_s3 + $0x30] sm:$0xff] %v442_v29 }
  0xf7   :  { %v411_v28 = vld [vmem:[#allocation2 + $0x98] sm:$0xff]  ;;  %v439_v32 = vadd.f32 %v743_v5, %v395_v27  ;;  %364 = vst.msk [vmem:[#allocation2 + $0x38] sm:$0xff] %vm19_vm0, %v332_v24  ;;  %380 = vst.msk [vmem:[#allocation2 + $0xb8] sm:$0xff] %vm19_vm0, %v348_v25  ;;  %v254_v34 = vpop.f32.mrb[8].mxu0  ;;  %v302_v35 = vpop.f32.mrb[8].mxu1 }
  0xf8   :  { %v455_v33 = vadd.f32 %v743_v5, %v411_v28  ;;  %490 = vst [vmem:[%s896_s3 + $0xb0] sm:$0xff] %v458_v30  ;;  %v256_v36 = vpop.f32.mrb[9].mxu0  ;;  %v304_v37 = vpop.f32.mrb[9].mxu1  ;;  %v444_v43 = vadd.f32 %v729_v45, %v254_v34  ;;  %v460_v44 = vadd.f32 %v729_v45, %v302_v35 }
  0xf9   :  { %471 = vst.msk [vmem:[%s896_s3 + $0x18] sm:$0xff] %vm19_vm0, %v439_v32  ;;  %v334_v38 = vadd.f32 %v256_v36, %v60_v26  ;;  %v350_v39 = vadd.f32 %v304_v37, %v76_v31 }
  0xfa   :  { %487 = vst.msk [vmem:[%s896_s3 + $0x98] sm:$0xff] %vm19_vm0, %v455_v33  ;;  %v397_v41 = vld [vmem:[#allocation2 + $0x28] sm:$0xff]  ;;  %476 = vst [vmem:[%s896_s3 + $0x40] sm:$0xff] %v444_v43 }
  0xfb   :  { %v413_v42 = vld [vmem:[#allocation2 + $0xa8] sm:$0xff]  ;;  %v441_v47 = vadd.f32 %v743_v5, %v397_v41  ;;  %366 = vst.msk [vmem:[#allocation2 + $0x48] sm:$0xff] %vm19_vm0, %v334_v38  ;;  %382 = vst.msk [vmem:[#allocation2 + $0xc8] sm:$0xff] %vm19_vm0, %v350_v39  ;;  %v260_v49 = vpop.f32.mrb[10].mxu0  ;;  %v308_v50 = vpop.f32.mrb[10].mxu1 }
  0xfc   :  { %v457_v48 = vadd.f32 %v743_v5, %v413_v42  ;;  %492 = vst [vmem:[%s896_s3 + $0xc0] sm:$0xff] %v460_v44  ;;  %v262_v51 = vpop.f32.mrb[11].mxu0  ;;  %v310_v52 = vpop.f32.mrb[11].mxu1  ;;  %v446_v58 = vadd.f32 %v729_v45, %v260_v49  ;;  %v462_v59 = vadd.f32 %v729_v45, %v308_v50 }
  0xfd   :  { %473 = vst.msk [vmem:[%s896_s3 + $0x28] sm:$0xff] %vm19_vm0, %v441_v47  ;;  %v336_v53 = vadd.f32 %v262_v51, %v62_v40  ;;  %v352_v54 = vadd.f32 %v310_v52, %v78_v46 }
  0xfe   :  { %489 = vst.msk [vmem:[%s896_s3 + $0xa8] sm:$0xff] %vm19_vm0, %v457_v48  ;;  %v399_v56 = vld [vmem:[#allocation2 + $0x38] sm:$0xff]  ;;  %478 = vst [vmem:[%s896_s3 + $0x50] sm:$0xff] %v446_v58 }
  0xff   :  { %v415_v57 = vld [vmem:[#allocation2 + $0xb8] sm:$0xff]  ;;  %v443_v61 = vadd.f32 %v743_v5, %v399_v56  ;;  %368 = vst.msk [vmem:[#allocation2 + $0x58] sm:$0xff] %vm19_vm0, %v336_v53  ;;  %384 = vst.msk [vmem:[#allocation2 + $0xd8] sm:$0xff] %vm19_vm0, %v352_v54  ;;  %v266_v63 = vpop.f32.mrb[12].mxu0  ;;  %v314_v0 = vpop.f32.mrb[12].mxu1 }
 0x100   :  { %v459_v62 = vadd.f32 %v743_v5, %v415_v57  ;;  %494 = vst [vmem:[%s896_s3 + $0xd0] sm:$0xff] %v462_v59  ;;  %v268_v1 = vpop.f32.mrb[13].mxu0  ;;  %v316_v2 = vpop.f32.mrb[13].mxu1  ;;  %v448_v9 = vadd.f32 %v729_v45, %v266_v63  ;;  %v464_v10 = vadd.f32 %v729_v45, %v314_v0 }
 0x101   :  { %475 = vst.msk [vmem:[%s896_s3 + $0x38] sm:$0xff] %vm19_vm0, %v443_v61  ;;  %v338_v3 = vadd.f32 %v268_v1, %v64_v55  ;;  %v354_v4 = vadd.f32 %v316_v2, %v80_v60 }
 0x102   :  { %491 = vst.msk [vmem:[%s896_s3 + $0xb8] sm:$0xff] %vm19_vm0, %v459_v62  ;;  %v401_v7 = vld [vmem:[#allocation2 + $0x48] sm:$0xff]  ;;  %480 = vst [vmem:[%s896_s3 + $0x60] sm:$0xff] %v448_v9 }
 0x103   :  { %v417_v8 = vld [vmem:[#allocation2 + $0xc8] sm:$0xff]  ;;  %v445_v12 = vadd.f32 %v743_v5, %v401_v7  ;;  %370 = vst.msk [vmem:[#allocation2 + $0x68] sm:$0xff] %vm19_vm0, %v338_v3  ;;  %386 = vst.msk [vmem:[#allocation2 + $0xe8] sm:$0xff] %vm19_vm0, %v354_v4  ;;  %v272_v14 = vpop.f32.mrb[14].mxu0  ;;  %v320_v15 = vpop.f32.mrb[14].mxu1 }
 0x104   :  { %v461_v13 = vadd.f32 %v743_v5, %v417_v8  ;;  %496 = vst [vmem:[%s896_s3 + $0xe0] sm:$0xff] %v464_v10  ;;  %v274_v16 = vpop.f32.mrb[15].mxu0  ;;  %v322_v17 = vpop.f32.mrb[15].mxu1  ;;  %v450_v22 = vadd.f32 %v729_v45, %v272_v14  ;;  %v466_v23 = vadd.f32 %v729_v45, %v320_v15 }
 0x105   :  { %477 = vst.msk [vmem:[%s896_s3 + $0x48] sm:$0xff] %vm19_vm0, %v445_v12  ;;  %v340_v18 = vadd.f32 %v274_v16, %v66_v6  ;;  %v356_v19 = vadd.f32 %v322_v17, %v82_v11 }
 0x106   :  { %493 = vst.msk [vmem:[%s896_s3 + $0xc8] sm:$0xff] %vm19_vm0, %v461_v13  ;;  %v403_v20 = vld [vmem:[#allocation2 + $0x58] sm:$0xff]  ;;  %482 = vst [vmem:[%s896_s3 + $0x70] sm:$0xff] %v450_v22 }
 0x107   :  { %v419_v21 = vld [vmem:[#allocation2 + $0xd8] sm:$0xff]  ;;  %v447_v24 = vadd.f32 %v743_v5, %v403_v20  ;;  %372 = vst.msk [vmem:[#allocation2 + $0x78] sm:$0xff] %vm19_vm0, %v340_v18  ;;  %388 = vst.msk [vmem:[#allocation2 + $0xf8] sm:$0xff] %vm19_vm0, %v356_v19 }
 0x108   :  { %v463_v25 = vadd.f32 %v743_v5, %v419_v21  ;;  %498 = vst [vmem:[%s896_s3 + $0xf0] sm:$0xff] %v466_v23 }
 0x109   :  { %479 = vst.msk [vmem:[%s896_s3 + $0x58] sm:$0xff] %vm19_vm0, %v447_v24 }
 0x10a   :  { %495 = vst.msk [vmem:[%s896_s3 + $0xd8] sm:$0xff] %vm19_vm0, %v463_v25  ;;  %v405_v45 = vld [vmem:[#allocation2 + $0x68] sm:$0xff] }
 0x10b   :  { %v421_v26 = vld [vmem:[#allocation2 + $0xe8] sm:$0xff]  ;;  %v449_v27 = vadd.f32 %v743_v5, %v405_v45 }
 0x10c   :  { %v465_v28 = vadd.f32 %v743_v5, %v421_v26 }
 0x10d   :  { %481 = vst.msk [vmem:[%s896_s3 + $0x68] sm:$0xff] %vm19_vm0, %v449_v27 }
 0x10e   :  { %497 = vst.msk [vmem:[%s896_s3 + $0xe8] sm:$0xff] %vm19_vm0, %v465_v28  ;;  %v407_v29 = vld [vmem:[#allocation2 + $0x78] sm:$0xff] }
 0x10f   :  { %v423_v30 = vld [vmem:[#allocation2 + $0xf8] sm:$0xff]  ;;  %v451_v31 = vadd.f32 %v743_v5, %v407_v29 }
 0x110   :  { %v467_v32 = vadd.f32 %v743_v5, %v423_v30 }
 0x111   :  { %483 = vst.msk [vmem:[%s896_s3 + $0x78] sm:$0xff] %vm19_vm0, %v451_v31 }
 0x112   :  { %499 = vst.msk [vmem:[%s896_s3 + $0xf8] sm:$0xff] %vm19_vm0, %v467_v32 }

</bundles_post_ra>
